<compile_context>
chip_gen: v7x
topology: tpu7x:2x2x1
jax: 0.10.0
libtpu: 0.0.40
codegen_flags: <defaults>
</compile_context>

<pallas_src>
import jax
import jax.numpy as jnp
from jax.experimental import pallas as pl
from jax.experimental.pallas import tpu as pltpu

LANES = 128
SUBLANES = 8


def _round_up(x, m):
    return (x + m - 1) // m * m


def _set2set_kernel(x_ref, w1_ref, b1_ref, w2_ref, b2_ref, w3_ref, b3_ref, o_ref):
    # prompt_set_enc: Linear + ReLU   (bf16 operands, f32 MXU accumulation)
    x = x_ref[...]
    h = jnp.dot(x, w1_ref[...], preferred_element_type=jnp.float32) + b1_ref[...]
    h = jnp.maximum(h, 0.0).astype(w2_ref.dtype)
    # set_gen: Linear + ReLU + Linear
    g = jnp.dot(h, w2_ref[...], preferred_element_type=jnp.float32) + b2_ref[...]
    g = jnp.maximum(g, 0.0).astype(w3_ref.dtype)
    out = jnp.dot(g, w3_ref[...], preferred_element_type=jnp.float32) + b3_ref[...]
    o_ref[...] = out.astype(o_ref.dtype)


def init_params(key, d_in, hidden, d_out):
    ks = jax.random.split(key, 6)
    scale = 0.05
    return {
        "w1": scale * jax.random.normal(ks[0], (d_in, hidden), jnp.float32),
        "b1": scale * jax.random.normal(ks[1], (1, hidden), jnp.float32),
        "w2": scale * jax.random.normal(ks[2], (hidden, hidden), jnp.float32),
        "b2": scale * jax.random.normal(ks[3], (1, hidden), jnp.float32),
        "w3": scale * jax.random.normal(ks[4], (hidden, d_out), jnp.float32),
        "b3": scale * jax.random.normal(ks[5], (1, d_out), jnp.float32),
    }


def prepare_params(params, compute_dtype=jnp.bfloat16):
    """Zero-pad every feature dim to a multiple of 128 (lane-dense) and cast the
    matmul operands to bf16.  Biases stay f32 (added to the f32 accumulator).
    Done once, outside the hot path; zero padding does not change results."""
    def pad2d(a, rows, cols, dtype):
        return jnp.pad(a, ((0, rows - a.shape[0]), (0, cols - a.shape[1]))).astype(dtype)

    d_in, h = params["w1"].shape
    d_out = params["w3"].shape[1]
    d_in_p, h_p, d_out_p = (_round_up(d, LANES) for d in (d_in, h, d_out))
    return {
        "w1": pad2d(params["w1"], d_in_p, h_p, compute_dtype),
        "b1": pad2d(params["b1"], 1, h_p, jnp.float32),
        "w2": pad2d(params["w2"], h_p, h_p, compute_dtype),
        "b2": pad2d(params["b2"], 1, h_p, jnp.float32),
        "w3": pad2d(params["w3"], h_p, d_out_p, compute_dtype),
        "b3": pad2d(params["b3"], 1, d_out_p, jnp.float32),
        "dims": (d_in, h, d_out),
    }


def set2set_forward(prompt, set_, padded_params, *, tile_m=512,
                    compute_dtype=jnp.bfloat16):
    """Mirrors Set2Set.forward(prompt, set).

    prompt: (B, N, D_in)  float32
    set_:   (B, S, D_set) float32 (only its shape[1] is used, as in the module)
    returns pred: (B, S+1, D_out)
    """
    assert set_.ndim == 3, f"Input set expect 3D tensor but got {set_.ndim}-D."
    B, N, D_in = prompt.shape
    d_in, _, d_out = padded_params["dims"]
    assert D_in == d_in, (D_in, d_in)

    num_out_token = set_.shape[1] + 1
    assert N >= num_out_token, (
        f"prompt has {N} tokens but {num_out_token} output tokens are required.")

    # The encoder/generator are per-token MLPs: only the trailing (S+1) tokens
    # survive the output slice, so only those need to be computed.
    tokens = prompt[:, N - num_out_token:, :]

    w1, b1 = padded_params["w1"], padded_params["b1"]
    w2, b2 = padded_params["w2"], padded_params["b2"]
    w3, b3 = padded_params["w3"], padded_params["b3"]
    D_in_p = w1.shape[0]
    D_out_p = w3.shape[1]

    M = B * num_out_token
    tile_m = min(tile_m, _round_up(M, SUBLANES))
    M_pad = _round_up(M, tile_m)

    x2d = tokens.reshape(M, D_in).astype(compute_dtype)
    x2d = jnp.pad(x2d, ((0, M_pad - M), (0, D_in_p - D_in)))

    grid = (M_pad // tile_m,)
    row_spec = lambda cols: pl.BlockSpec((tile_m, cols), lambda i: (i, 0))
    resident = lambda shape: pl.BlockSpec(shape, lambda i: (0, 0))

    out2d = pl.pallas_call(
        _set2set_kernel,
        out_shape=jax.ShapeDtypeStruct((M_pad, D_out_p), jnp.float32),
        grid_spec=pltpu.PrefetchScalarGridSpec(
            num_scalar_prefetch=0,
            grid=grid,
            in_specs=[
                row_spec(D_in_p),
                resident(w1.shape), resident(b1.shape),
                resident(w2.shape), resident(b2.shape),
                resident(w3.shape), resident(b3.shape),
            ],
            out_specs=row_spec(D_out_p),
        ),
        compiler_params=pltpu.CompilerParams(
            dimension_semantics=("parallel",),
            vmem_limit_bytes=32 * 1024 * 1024,
        ),
    )(x2d, w1, b1, w2, b2, w3, b3)

    # Drop row padding and lane padding, restore (B, S+1, D_out).
    pred = out2d[:M, :d_out].reshape(B, num_out_token, d_out)
    return pred


if __name__ == "__main__":
    key = jax.random.PRNGKey(0)
    k_prompt, k_set, k_params = jax.random.split(key, 3)

    B, N, D_in = 2, 12, 32     # prompt set: 12 tokens (>= S+1)
    S, D_set = 8, 16           # target set (only shape[1] matters in forward)
    H, D_out = 32, 16

    prompt = jax.random.normal(k_prompt, (B, N, D_in), jnp.float32)
    set_ = jax.random.normal(k_set, (B, S, D_set), jnp.float32)
    params = init_params(k_params, D_in, H, D_out)
    padded = prepare_params(params)

    pred = set2set_forward(prompt, set_, padded)
    pred = jax.block_until_ready(pred)
    assert pred.shape == (B, S + 1, D_out), pred.shape

    # pure-JAX reference (same bf16 operands / f32 accumulation as the kernel)
    cd = jnp.bfloat16
    num_out = S + 1
    xr = prompt[:, -num_out:].reshape(B * num_out, D_in).astype(cd)
    h = jnp.maximum(
        jnp.dot(xr, params["w1"].astype(cd), preferred_element_type=jnp.float32)
        + params["b1"], 0.0).astype(cd)
    g = jnp.maximum(
        jnp.dot(h, params["w2"].astype(cd), preferred_element_type=jnp.float32)
        + params["b2"], 0.0).astype(cd)
    ref = (jnp.dot(g, params["w3"].astype(cd), preferred_element_type=jnp.float32)
           + params["b3"]).reshape(B, num_out, D_out)
    max_err = float(jnp.max(jnp.abs(pred - ref)))
    assert jnp.allclose(pred, ref, atol=1e-2, rtol=1e-2), max_err

    print("KERNEL_OK")
</pallas_src>

<mosaic_0001>
module attributes {stable_mosaic.version = 11 : i64} {
  func.func @_set2set_kernel(%arg0: i32, %arg1: memref<24x128xbf16, #tpu.memory_space<vmem>>, %arg2: memref<128x128xbf16, #tpu.memory_space<vmem>>, %arg3: memref<1x128xf32, #tpu.memory_space<vmem>>, %arg4: memref<128x128xbf16, #tpu.memory_space<vmem>>, %arg5: memref<1x128xf32, #tpu.memory_space<vmem>>, %arg6: memref<128x128xbf16, #tpu.memory_space<vmem>>, %arg7: memref<1x128xf32, #tpu.memory_space<vmem>>, %arg8: memref<24x128xf32, #tpu.memory_space<vmem>>) attributes {dimension_semantics = [#tpu.dimension_semantics<parallel>], iteration_bounds = array<i64: 1>, scalar_prefetch = 0 : i64, scratch_operands = 0 : i64, tpu.core_type = #tpu.core_type<tc>, window_params = [{transform_indices = @transform_0, window_bounds = array<i64: 24, 128>}, {pipeline_mode = #tpu.pipeline_mode<synchronous>, transform_indices = @transform_1, window_bounds = array<i64: 128, 128>}, {pipeline_mode = #tpu.pipeline_mode<synchronous>, transform_indices = @transform_2, window_bounds = array<i64: 1, 128>}, {pipeline_mode = #tpu.pipeline_mode<synchronous>, transform_indices = @transform_3, window_bounds = array<i64: 128, 128>}, {pipeline_mode = #tpu.pipeline_mode<synchronous>, transform_indices = @transform_4, window_bounds = array<i64: 1, 128>}, {pipeline_mode = #tpu.pipeline_mode<synchronous>, transform_indices = @transform_5, window_bounds = array<i64: 128, 128>}, {pipeline_mode = #tpu.pipeline_mode<synchronous>, transform_indices = @transform_6, window_bounds = array<i64: 1, 128>}, {transform_indices = @transform_7, window_bounds = array<i64: 24, 128>}]} {
    %c0 = arith.constant 0 : index
    %c0_0 = arith.constant 0 : index
    %0 = vector.load %arg1[%c0, %c0_0] : memref<24x128xbf16, #tpu.memory_space<vmem>>, vector<24x128xbf16>
    %c0_1 = arith.constant 0 : index
    %c0_2 = arith.constant 0 : index
    %1 = vector.load %arg2[%c0_1, %c0_2] : memref<128x128xbf16, #tpu.memory_space<vmem>>, vector<128x128xbf16>
    %cst = arith.constant dense<0.000000e+00> : vector<24x128xf32>
    %2 = tpu.matmul %0, %1, %cst {dimension_numbers = #tpu.dot_dimension_numbers<[1], [0], [0], [1], [0, 0, 1, 1], [], []>} : vector<24x128xbf16>, vector<128x128xbf16>, vector<24x128xf32> -> vector<24x128xf32>
    %c0_3 = arith.constant 0 : index
    %c0_4 = arith.constant 0 : index
    %3 = vector.load %arg3[%c0_3, %c0_4] : memref<1x128xf32, #tpu.memory_space<vmem>>, vector<1x128xf32>
    %4 = vector.broadcast %3 : vector<1x128xf32> to vector<24x128xf32>
    %5 = arith.addf %2, %4 : vector<24x128xf32>
    %cst_5 = arith.constant 0.000000e+00 : f32
    %6 = vector.broadcast %cst_5 : f32 to vector<24x128xf32>
    %7 = arith.maximumf %5, %6 : vector<24x128xf32>
    %8 = arith.truncf %7 : vector<24x128xf32> to vector<24x128xbf16>
    %c0_6 = arith.constant 0 : index
    %c0_7 = arith.constant 0 : index
    %9 = vector.load %arg4[%c0_6, %c0_7] : memref<128x128xbf16, #tpu.memory_space<vmem>>, vector<128x128xbf16>
    %cst_8 = arith.constant dense<0.000000e+00> : vector<24x128xf32>
    %10 = tpu.matmul %8, %9, %cst_8 {dimension_numbers = #tpu.dot_dimension_numbers<[1], [0], [0], [1], [0, 0, 1, 1], [], []>} : vector<24x128xbf16>, vector<128x128xbf16>, vector<24x128xf32> -> vector<24x128xf32>
    %c0_9 = arith.constant 0 : index
    %c0_10 = arith.constant 0 : index
    %11 = vector.load %arg5[%c0_9, %c0_10] : memref<1x128xf32, #tpu.memory_space<vmem>>, vector<1x128xf32>
    %12 = vector.broadcast %11 : vector<1x128xf32> to vector<24x128xf32>
    %13 = arith.addf %10, %12 : vector<24x128xf32>
    %cst_11 = arith.constant 0.000000e+00 : f32
    %14 = vector.broadcast %cst_11 : f32 to vector<24x128xf32>
    %15 = arith.maximumf %13, %14 : vector<24x128xf32>
    %16 = arith.truncf %15 : vector<24x128xf32> to vector<24x128xbf16>
    %c0_12 = arith.constant 0 : index
    %c0_13 = arith.constant 0 : index
    %17 = vector.load %arg6[%c0_12, %c0_13] : memref<128x128xbf16, #tpu.memory_space<vmem>>, vector<128x128xbf16>
    %cst_14 = arith.constant dense<0.000000e+00> : vector<24x128xf32>
    %18 = tpu.matmul %16, %17, %cst_14 {dimension_numbers = #tpu.dot_dimension_numbers<[1], [0], [0], [1], [0, 0, 1, 1], [], []>} : vector<24x128xbf16>, vector<128x128xbf16>, vector<24x128xf32> -> vector<24x128xf32>
    %c0_15 = arith.constant 0 : index
    %c0_16 = arith.constant 0 : index
    %19 = vector.load %arg7[%c0_15, %c0_16] : memref<1x128xf32, #tpu.memory_space<vmem>>, vector<1x128xf32>
    %20 = vector.broadcast %19 : vector<1x128xf32> to vector<24x128xf32>
    %21 = arith.addf %18, %20 : vector<24x128xf32>
    %c0_17 = arith.constant 0 : index
    %c0_18 = arith.constant 0 : index
    %22 = vector.load %arg8[%c0_17, %c0_18] : memref<24x128xf32, #tpu.memory_space<vmem>>, vector<24x128xf32>
    tpu.vector_store %arg8[%c0_17, %c0_18], %21 {strides = array<i32>} : memref<24x128xf32, #tpu.memory_space<vmem>>, vector<24x128xf32>,
    return
  }
  func.func @transform_0(%arg0: i32) -> (i32, i32) {
    %c0_i32 = arith.constant 0 : i32
    %c0_i32_0 = arith.constant 0 : i32
    return %arg0, %c0_i32 : i32, i32
  }
  func.func @transform_1(%arg0: i32) -> (i32, i32) {
    %c0_i32 = arith.constant 0 : i32
    %c0_i32_0 = arith.constant 0 : i32
    %c0_i32_1 = arith.constant 0 : i32
    return %c0_i32, %c0_i32_0 : i32, i32
  }
  func.func @transform_2(%arg0: i32) -> (i32, i32) {
    %c0_i32 = arith.constant 0 : i32
    %c0_i32_0 = arith.constant 0 : i32
    %c0_i32_1 = arith.constant 0 : i32
    return %c0_i32, %c0_i32_0 : i32, i32
  }
  func.func @transform_3(%arg0: i32) -> (i32, i32) {
    %c0_i32 = arith.constant 0 : i32
    %c0_i32_0 = arith.constant 0 : i32
    %c0_i32_1 = arith.constant 0 : i32
    return %c0_i32, %c0_i32_0 : i32, i32
  }
  func.func @transform_4(%arg0: i32) -> (i32, i32) {
    %c0_i32 = arith.constant 0 : i32
    %c0_i32_0 = arith.constant 0 : i32
    %c0_i32_1 = arith.constant 0 : i32
    return %c0_i32, %c0_i32_0 : i32, i32
  }
  func.func @transform_5(%arg0: i32) -> (i32, i32) {
    %c0_i32 = arith.constant 0 : i32
    %c0_i32_0 = arith.constant 0 : i32
    %c0_i32_1 = arith.constant 0 : i32
    return %c0_i32, %c0_i32_0 : i32, i32
  }
  func.func @transform_6(%arg0: i32) -> (i32, i32) {
    %c0_i32 = arith.constant 0 : i32
    %c0_i32_0 = arith.constant 0 : i32
    %c0_i32_1 = arith.constant 0 : i32
    return %c0_i32, %c0_i32_0 : i32, i32
  }
  func.func @transform_7(%arg0: i32) -> (i32, i32) {
    %c0_i32 = arith.constant 0 : i32
    %c0_i32_0 = arith.constant 0 : i32
    return %arg0, %c0_i32 : i32, i32
  }
}

</mosaic_0001>

<bundles_post_ra>
// kernel: tpu_custom_call.1
= control target key start
LH: loop header
LB: loop body
LE: loop exit
PB: predicated region body
PF: predicated region fallthrough
CT: control target
= control target key end

     0   :  { %12 = vsyncpa [#allocation3], 0  ;;  %s901_s0 = inlined_call_operand.hbm [shape: bf16[24,128], index: 0, kind: input, shape index: {}]   ;;  %s902_s1 = inlined_call_operand.hbm [shape: bf16[128,128], index: 1, kind: input, shape index: {}]   ;;  %s903_s2 = inlined_call_operand.vmem [shape: f32[1,128], index: 2, kind: input, shape index: {}]   ;;  %s904_s3 = inlined_call_operand.hbm [shape: bf16[128,128], index: 3, kind: input, shape index: {}]   ;;  %s905_s4 = inlined_call_operand.vmem [shape: f32[1,128], index: 4, kind: input, shape index: {}]   ;;  %s906_s5 = inlined_call_operand.hbm [shape: bf16[128,128], index: 5, kind: input, shape index: {}]   ;;  %s907_s6 = inlined_call_operand.vmem [shape: f32[1,128], index: 6, kind: input, shape index: {}]   ;;  %s908_s7 = inlined_call_operand.hbm [shape: f32[24,128], index: 7, kind: output, shape index: {}]  }
   0x1   :  { %13 = vsyncpa [#allocation6], 0 }
   0x2   :  { %14 = vsyncpa [#allocation9], 0 }
   0x3   :  { %15 = vsyncpa [#allocation4], 0  ;;  %s757_s24 = smov [#allocation5]   ;;  %s758_s26 = smov [#allocation2]  }
   0x4   :  { %s33_s25 = sshll.u32 %s757_s24, 4  ;;  %s21_s27 = sshll.u32 %s758_s26, 4  ;;  %s34_s25 = int_to_ptr.vmem [resolvable:$true] %s33_s25  ;;  %s806_s27 = int_to_ptr.vmem [resolvable:$true] %s21_s27 }
   0x5   :  { %s639_s30 = scalar_lea.hbm %s902_s1, 1024 }
   0x6   :  { %p640_p0 = scmp.ne.s32.totalorder %s902_s1, %s639_s30  ;;  %p643_p1 = scmp.lt.u32.totalorder %s639_s30, %s902_s1 }
   0x8   :  { %p645_p2 = pnand %p643_p1, %p640_p0 }
   0xa   :  { %648 = shalt.err (!%p645_p2)
}
   0xb   :  { %s649_s12 = scalar_lea.vmem %s34_s25, 1024  ;;  %p654_p4 = scmp.lt.s32.totalorder %s34_s25, %s34_s25 }
   0xc   :  { %p650_p3 = scmp.ne.s32.totalorder %s34_s25, %s649_s12  ;;  %p655_p5 = scmp.lt.s32.totalorder %s649_s12, %s649_s12 }
   0xe   :  { %p656_p6 = por %p655_p5, %p654_p4 }
  0x10   :  { %p657_p7 = pnand %p656_p6, %p650_p3 }
  0x12   :  { %660 = shalt.err (!%p657_p7)
}
  0x13   :  { %s759_s13 = smov 64   ;;  %s760_s14 = smov 4  }
  0x14   :  { %39 = dma.hbm_to_vmem [thread:$0]  %s902_s1, 1024, %s34_s25, [#allocation6], %s759_s13, %s759_s13, %s760_s14  }
  0x15   :  { %s661_s19 = scalar_lea.hbm %s901_s0, 192 }
  0x16   :  { %p662_p8 = scmp.ne.s32.totalorder %s901_s0, %s661_s19  ;;  %p665_p9 = scmp.lt.u32.totalorder %s661_s19, %s901_s0 }
  0x18   :  { %p667_p10 = pnand %p665_p9, %p662_p8 }
  0x1a   :  { %670 = shalt.err (!%p667_p10)
}
  0x1b   :  { %s671_s24 = scalar_lea.vmem %s806_s27, 192  ;;  %p676_p12 = scmp.lt.s32.totalorder %s806_s27, %s806_s27 }
  0x1c   :  { %p672_p11 = scmp.ne.s32.totalorder %s806_s27, %s671_s24  ;;  %p677_p13 = scmp.lt.s32.totalorder %s671_s24, %s671_s24 }
  0x1e   :  { %p678_p0 = por %p677_p13, %p676_p12 }
  0x20   :  { %p679_p1 = pnand %p678_p0, %p672_p11 }
  0x22   :  { %682 = shalt.err (!%p679_p1)
}
  0x23   :  { %27 = dma.hbm_to_vmem [thread:$0]  %s901_s0, 192, %s806_s27, [#allocation3], %s759_s13, %s759_s13, %s760_s14  }
  0x24   :  { %s761_s26 = smov [#allocation7]   ;;  %s762_s29 = smov [#allocation8]  }
  0x25   :  { %s47_s28 = sshll.u32 %s761_s26, 4  ;;  %s61_s30 = sshll.u32 %s762_s29, 4  ;;  %s48_s28 = int_to_ptr.vmem [resolvable:$true] %s47_s28  ;;  %s843_s30 = int_to_ptr.vmem [resolvable:$true] %s61_s30 }
  0x26   :  { %s683_s10 = scalar_lea.hbm %s904_s3, 1024 }
  0x27   :  { %p684_p2 = scmp.ne.s32.totalorder %s904_s3, %s683_s10  ;;  %p687_p3 = scmp.lt.u32.totalorder %s683_s10, %s904_s3 }
  0x29   :  { %p689_p4 = pnand %p687_p3, %p684_p2 }
  0x2b   :  { %692 = shalt.err (!%p689_p4)
}
  0x2c   :  { %s693_s0 = scalar_lea.vmem %s48_s28, 1024  ;;  %p698_p6 = scmp.lt.s32.totalorder %s48_s28, %s48_s28 }
  0x2d   :  { %p694_p5 = scmp.ne.s32.totalorder %s48_s28, %s693_s0  ;;  %p699_p7 = scmp.lt.s32.totalorder %s693_s0, %s693_s0 }
  0x2f   :  { %p700_p8 = por %p699_p7, %p698_p6 }
  0x31   :  { %p701_p9 = pnand %p700_p8, %p694_p5 }
  0x33   :  { %704 = shalt.err (!%p701_p9)
}
  0x34   :  { %53 = dma.hbm_to_vmem [thread:$0]  %s904_s3, 1024, %s48_s28, [#allocation6], %s759_s13, %s759_s13, %s760_s14  }
  0x35   :  { %s705_s20 = scalar_lea.hbm %s906_s5, 1024 }
  0x36   :  { %p706_p10 = scmp.ne.s32.totalorder %s906_s5, %s705_s20  ;;  %p709_p11 = scmp.lt.u32.totalorder %s705_s20, %s906_s5 }
  0x38   :  { %p711_p12 = pnand %p709_p11, %p706_p10 }
  0x3a   :  { %714 = shalt.err (!%p711_p12)
}
  0x3b   :  { %s715_s1 = scalar_lea.vmem %s843_s30, 1024  ;;  %p720_p0 = scmp.lt.s32.totalorder %s843_s30, %s843_s30 }
  0x3c   :  { %p716_p13 = scmp.ne.s32.totalorder %s843_s30, %s715_s1  ;;  %p721_p1 = scmp.lt.s32.totalorder %s715_s1, %s715_s1 }
  0x3e   :  { %p722_p2 = por %p721_p1, %p720_p0 }
  0x40   :  { %p723_p3 = pnand %p722_p2, %p716_p13 }
  0x42   :  { %726 = shalt.err (!%p723_p3)
}
  0x43   :  { %67 = dma.hbm_to_vmem [thread:$0]  %s906_s5, 1024, %s843_s30, [#allocation9], %s759_s13, %s759_s13, %s760_s14  }
  0x44   :  { %749 = dma.done.wait [#allocation3], 192  }
  0x45   :  { %750 = vsyncadd [#allocation3], 4294967104 }
  0x46   :  { %751 = dma.done.wait [#allocation6], 2048  }
  0x47   :  { %752 = vsyncadd [#allocation6], 4294965248 }
  0x48   :  { %753 = dma.done.wait [#allocation9], 1024  }
  0x49   :  { %754 = vsyncadd [#allocation9], 4294966272  ;;  %v613_v0 = vld [vmem:[#allocation5] sm:$0xff]   ;;  %v614_v1 = vld [vmem:[#allocation5 + $0x8] sm:$0xff]  }
  0x4a   :  { %544 = vmatprep.subr.bf16.mxu0 %v613_v0  ;;  %v615_v2 = vld [vmem:[#allocation5 + $0x10] sm:$0xff]   ;;  %v616_v3 = vld [vmem:[#allocation5 + $0x18] sm:$0xff]   ;;  %v623_v5 = vld [vmem:[#allocation7] sm:$0xff]  }
  0x4b   :  { %545 = vmatpush3.bf16.msra.mxu0 %v613_v0  ;;  %v621_v4 = vld [vmem:[#allocation2] sm:$0xff]   ;;  %v624_v6 = vld [vmem:[#allocation7 + $0x8] sm:$0xff]   ;;  %v617_v7 = vld [vmem:[#allocation5 + $0x20] sm:$0xff]   ;;  %564 = vmatprep.subr.bf16.mxu1 %v623_v5 }
  0x4c   :  { %546 = vmatprep.subr.bf16.mxu0 %v614_v1  ;;  %560 = vmatprep.mubr.bf16.mxu0 %v621_v4  ;;  %v625_v8 = vld [vmem:[#allocation7 + $0x10] sm:$0xff]   ;;  %v618_v9 = vld [vmem:[#allocation5 + $0x28] sm:$0xff]   ;;  %v626_v10 = vld [vmem:[#allocation7 + $0x18] sm:$0xff]  }
  0x4d   :  { %565 = vmatpush3.bf16.msra.mxu1 %v623_v5  ;;  %v619_v11 = vld [vmem:[#allocation5 + $0x30] sm:$0xff]   ;;  %v627_v12 = vld [vmem:[#allocation7 + $0x20] sm:$0xff]   ;;  %v620_v13 = vld [vmem:[#allocation5 + $0x38] sm:$0xff]  }
  0x4e   :  { %566 = vmatprep.subr.bf16.mxu1 %v624_v6  ;;  %v628_v14 = vld [vmem:[#allocation7 + $0x28] sm:$0xff]   ;;  %v622_v15 = vld [vmem:[#allocation2 + $0x8] ss:$0 sps:$4 sm:$0xff]   ;;  %v629_v16 = vld [vmem:[#allocation7 + $0x30] sm:$0xff]  }
  0x4f   :  { %547 = vmatpush3.bf16.msra.mxu0 %v614_v1  ;;  %v630_v17 = vld [vmem:[#allocation7 + $0x38] sm:$0xff]   ;;  %v631_v18 = vld [vmem:[#allocation8] sm:$0xff]   ;;  %v632_v19 = vld [vmem:[#allocation8 + $0x8] sm:$0xff]  }
  0x50   :  { %548 = vmatprep.subr.bf16.mxu0 %v615_v2  ;;  %v633_v20 = vld [vmem:[#allocation8 + $0x10] sm:$0xff]   ;;  %v634_v21 = vld [vmem:[#allocation8 + $0x18] sm:$0xff]   ;;  %v635_v22 = vld [vmem:[#allocation8 + $0x20] sm:$0xff]  }
  0x51   :  { %567 = vmatpush3.bf16.msra.mxu1 %v624_v6  ;;  %v636_v23 = vld [vmem:[#allocation8 + $0x28] sm:$0xff]   ;;  %v485_v24 = vld [vmem:[%s903_s2] ss:$0 sm:$0xff]  ;;  %v638_v38 = vld [vmem:[#allocation8 + $0x38] sm:$0xff]  }
  0x52   :  { %568 = vmatprep.subr.bf16.mxu1 %v625_v8  ;;  %v637_v37 = vld [vmem:[#allocation8 + $0x30] sm:$0xff]  }
  0x53   :  { %549 = vmatpush3.bf16.msra.mxu0 %v615_v2  ;;  %v496_v39 = vld [vmem:[%s905_s4] ss:$0 sm:$0xff]  ;;  %s763_s4 = smov [#allocation10]  }
  0x54   :  { %550 = vmatprep.subr.bf16.mxu0 %v616_v3  ;;  %v505_v52 = vld [vmem:[%s907_s6] ss:$0 sm:$0xff]  ;;  %s471_s29 = sshll.u32 %s763_s4, 4  ;;  %s472_s29 = int_to_ptr.vmem [resolvable:$true] %s471_s29 }
  0x55   :  { %569 = vmatpush3.bf16.msra.mxu1 %v625_v8  ;;  %s727_s30 = scalar_lea.vmem %s472_s29, 384  ;;  %p732_p5 = scmp.lt.s32.totalorder %s472_s29, %s472_s29 }
  0x56   :  { %570 = vmatprep.subr.bf16.mxu1 %v626_v10  ;;  %p728_p4 = scmp.ne.s32.totalorder %s472_s29, %s727_s30  ;;  %p733_p6 = scmp.lt.s32.totalorder %s727_s30, %s727_s30 }
  0x57   :  { %551 = vmatpush3.bf16.msra.mxu0 %v616_v3 }
  0x58   :  { %552 = vmatprep.subr.bf16.mxu0 %v617_v7  ;;  %p734_p7 = por %p733_p6, %p732_p5 }
  0x59   :  { %571 = vmatpush3.bf16.msra.mxu1 %v626_v10 }
  0x5a   :  { %572 = vmatprep.subr.bf16.mxu1 %v627_v12  ;;  %p735_p8 = pnand %p734_p7, %p728_p4 }
  0x5b   :  { %553 = vmatpush3.bf16.msra.mxu0 %v617_v7 }
  0x5c   :  { %554 = vmatprep.subr.bf16.mxu0 %v618_v9 }
  0x5d   :  { %573 = vmatpush3.bf16.msra.mxu1 %v627_v12 }
  0x5e   :  { %574 = vmatprep.subr.bf16.mxu1 %v628_v14 }
  0x5f   :  { %555 = vmatpush3.bf16.msra.mxu0 %v618_v9 }
  0x60   :  { %556 = vmatprep.subr.bf16.mxu0 %v619_v11 }
  0x61   :  { %575 = vmatpush3.bf16.msra.mxu1 %v628_v14 }
  0x62   :  { %576 = vmatprep.subr.bf16.mxu1 %v629_v16 }
  0x63   :  { %557 = vmatpush3.bf16.msra.mxu0 %v619_v11 }
  0x64   :  { %558 = vmatprep.subr.bf16.mxu0 %v620_v13 }
  0x65   :  { %577 = vmatpush3.bf16.msra.mxu1 %v629_v16 }
  0x66   :  { %578 = vmatprep.subr.bf16.mxu1 %v630_v17 }
  0x67   :  { %559 = vmatpush3.bf16.msra.mxu0 %v620_v13 }
  0x68   :  { %584 = vmatprep.subr.bf16.mxu0 %v631_v18 }
  0x69   :  { %579 = vmatpush3.bf16.msra.mxu1 %v630_v17 }
  0x6a   :  { %561 = vmatmul.mubr.bf16.vlgmr.msra.gmra.mrb[0].mxu0 %v622_v15 }
  0x6b   :  { %585 = vmatpush3.bf16.msra.mxu0 %v631_v18 }
  0x6c   :  { %586 = vmatprep.subr.bf16.mxu0 %v632_v19 }
  0x6f   :  { %587 = vmatpush3.bf16.msra.mxu0 %v632_v19 }
  0x70   :  { %588 = vmatprep.subr.bf16.mxu0 %v633_v20 }
  0x73   :  { %589 = vmatpush3.bf16.msra.mxu0 %v633_v20 }
  0x74   :  { %590 = vmatprep.subr.bf16.mxu0 %v634_v21 }
  0x77   :  { %591 = vmatpush3.bf16.msra.mxu0 %v634_v21 }
  0x78   :  { %592 = vmatprep.subr.bf16.mxu0 %v635_v22 }
  0x7b   :  { %593 = vmatpush3.bf16.msra.mxu0 %v635_v22 }
  0x7c   :  { %594 = vmatprep.subr.bf16.mxu0 %v636_v23 }
  0x7f   :  { %595 = vmatpush3.bf16.msra.mxu0 %v636_v23 }
  0x80   :  { %596 = vmatprep.subr.bf16.mxu0 %v637_v37 }
  0x83   :  { %597 = vmatpush3.bf16.msra.mxu0 %v637_v37 }
  0x84   :  { %598 = vmatprep.subr.bf16.mxu0 %v638_v38 }
  0x87   :  { %599 = vmatpush3.bf16.msra.mxu0 %v638_v38 }
 0x13d   :  { %v562_v25 = vpop.f32.mrb[0].mxu0 }
 0x13e   :  { %v210_v26 = vadd.f32 %v562_v25, %v485_v24  ;;  %v201_v27 = vpop.f32.mrb[1].mxu0 }
 0x13f   :  { %v202_v28 = vadd.f32 %v485_v24, %v201_v27  ;;  %v563_v29 = vpop.f32.mrb[2].mxu0 }
 0x140   :  { %v204_v30 = vpop.f32.mrb[3].mxu0  ;;  %v217_v32 = vmax.f32 %v210_v26, 0.0 }
 0x141   :  { %v205_v31 = vadd.f32 %v485_v24, %v204_v30  ;;  %v215_v33 = vmax.f32 %v202_v28, 0.0 }
 0x142   :  { %v219_v36 = vpack.c.bf16 %v217_v32, %v217_v32 }
 0x143   :  { %v216_v34 = vmax.f32 %v205_v31, 0.0 }
 0x145   :  { %v218_v35 = vpack.c.bf16 %v216_v34, %v215_v33 }
 0x147   :  { %580 = vmatprep.mubr.bf16.mxu1 %v218_v35 }
 0x148   :  { %581 = vmatmul.mubr.bf16.vlgmr.msra.gmra.mrb[0].mxu1 %v219_v36 }
 0x21b   :  { %v582_v40 = vpop.f32.mrb[0].mxu1 }
 0x21c   :  { %v334_v41 = vadd.f32 %v582_v40, %v496_v39  ;;  %v325_v42 = vpop.f32.mrb[1].mxu1 }
 0x21d   :  { %v326_v43 = vadd.f32 %v496_v39, %v325_v42  ;;  %v583_v44 = vpop.f32.mrb[2].mxu1 }
 0x21e   :  { %v328_v45 = vpop.f32.mrb[3].mxu1  ;;  %v341_v47 = vmax.f32 %v334_v41, 0.0 }
 0x21f   :  { %v329_v46 = vadd.f32 %v496_v39, %v328_v45  ;;  %v339_v48 = vmax.f32 %v326_v43, 0.0 }
 0x220   :  { %v343_v51 = vpack.c.bf16 %v341_v47, %v341_v47 }
 0x221   :  { %v340_v49 = vmax.f32 %v329_v46, 0.0 }
 0x223   :  { %v342_v50 = vpack.c.bf16 %v340_v49, %v339_v48 }
 0x225   :  { %600 = vmatprep.mubr.bf16.mxu0 %v342_v50 }
 0x226   :  { %601 = vmatmul.mubr.bf16.vlgmr.msra.gmra.mrb[4].mxu0 %v343_v51 }
 0x2f9   :  { %v602_v53 = vpop.f32.mrb[4].mxu0 }
 0x2fa   :  { %v458_v54 = vadd.f32 %v602_v53, %v505_v52  ;;  %v449_v55 = vpop.f32.mrb[5].mxu0 }
 0x2fb   :  { %v450_v56 = vadd.f32 %v505_v52, %v449_v55  ;;  %v603_v57 = vpop.f32.mrb[6].mxu0 }
 0x2fc   :  { %465 = vst [vmem:[#allocation10 + $0x10] sm:$0xff] %v458_v54  ;;  %v452_v58 = vpop.f32.mrb[7].mxu0 }
 0x2fd   :  { %463 = vst [vmem:[#allocation10] sm:$0xff] %v450_v56  ;;  %v453_v59 = vadd.f32 %v505_v52, %v452_v58 }
 0x2ff   :  { %464 = vst [vmem:[#allocation10 + $0x8] sm:$0xff] %v453_v59 }
 0x300   :  { %738 = shalt.err (!%p735_p8)
}
 0x301   :  { %s739_s9 = scalar_lea.hbm %s908_s7, 384 }
 0x302   :  { %p740_p9 = scmp.ne.s32.totalorder %s908_s7, %s739_s9  ;;  %p743_p10 = scmp.lt.u32.totalorder %s739_s9, %s908_s7 }
 0x304   :  { %p745_p11 = pnand %p743_p10, %p740_p9 }
 0x306   :  { %748 = shalt.err (!%p745_p11)
}
 0x307   :  { %s764_s16 = smov 128   ;;  %s765_s0 = smov 8  }
 0x308   :  { %477 = dma.vmem_to_hbm [thread:$0]  %s472_s29, 384, %s908_s7, [#allocation4], %s764_s16, %s764_s16, %s765_s0  }
 0x309   :  { %755 = dma.done.wait [#allocation4], 384  }
 0x30a   :  { %756 = vsyncadd [#allocation4], 4294966912 }
 0x30b   :  { %481 = vsyncpa [#allocation3], 1 }
 0x30c   :  { %482 = vsyncpa [#allocation6], 1 }
 0x30d   :  { %483 = vsyncpa [#allocation9], 1 }
 0x30e   :  { %484 = vsyncpa [#allocation4], 1 }

</bundles_post_ra>
